<compile_context>
chip_gen: v7x
topology: tpu7x:2x2x1
jax: 0.10.0
libtpu: 0.0.40
codegen_flags: <defaults>
</compile_context>

<pallas_src>
import functools
import numpy as np

import jax
import jax.numpy as jnp
from jax import lax
from jax.experimental import pallas as pl
from jax.experimental.pallas import tpu as pltpu


_VMEM_LIMIT = 40 * 1024 * 1024          # safe on v5e/v6e (128 MiB) and v7x (64 MiB)
_BLOCK_BUDGET = 16 * 1024 * 1024        # VMEM budget for double-buffered blocks


def _pick_tile(n_rows, d, n_row_buffers, budget_bytes=_BLOCK_BUDGET, cap=1024):
    """Largest row tile that keeps all row-blocks (+ scratch) under budget."""
    per_row = max(1, n_row_buffers * d * 4)
    max_rows = max(8, min(cap, budget_bytes // per_row))
    if n_rows <= max_rows:
        return int(n_rows)               # full dim -> no (8,128) constraint issue
    return max(8, (int(max_rows) // 8) * 8)


# ----------------------------------------------------------------------------
# Kernel 1: fused patch-level DINO loss (loss_d) + teacher column-sum
# ----------------------------------------------------------------------------
def _loss_d_kernel(t_ref, s_ref, c_ref, loss_ref, colsum_ref, q_ref,
                   *, inv_t_temp, inv_s_temp, rows, tile):
    iq = pl.program_id(0)
    i = pl.program_id(1)
    v = pl.program_id(2)

    row_ids = lax.broadcasted_iota(jnp.int32, (tile, 1), 0) + i * tile
    valid = row_ids < rows                       # (tile, 1) row mask for tail block
    validf = valid.astype(jnp.float32)

    @pl.when((iq == 0) & (i == 0) & (v == 0))
    def _init():
        loss_ref[...] = jnp.zeros_like(loss_ref)
        colsum_ref[...] = jnp.zeros_like(colsum_ref)

    # Teacher pass: softmax + raw column-sum, computed ONCE per (iq, i) block
    # and reused across all (ncrops - 1) student crops (innermost v axis).
    @pl.when(v == 0)
    def _teacher():
        t_raw = jnp.where(valid, t_ref[0].astype(jnp.float32), 0.0)    # (tile, D)
        colsum_ref[...] = colsum_ref[...] + jnp.sum(t_raw, axis=0, keepdims=True)
        t = (t_raw - c_ref[...]) * inv_t_temp
        t = t - jnp.max(t, axis=-1, keepdims=True)
        e = jnp.exp(t)
        denom = jnp.sum(e, axis=-1, keepdims=True)
        q_ref[...] = e * pl.reciprocal(denom, approx=True)

    # Student log-softmax + CE (every step).
    s_raw = jnp.where(valid, s_ref[0].astype(jnp.float32), 0.0)         # (tile, D)
    s = s_raw * inv_s_temp
    s_max = jnp.max(s, axis=-1, keepdims=True)
    lse = jnp.log(jnp.sum(jnp.exp(s - s_max), axis=-1, keepdims=True)) + s_max
    ce = -jnp.sum(q_ref[...] * (s - lse), axis=-1, keepdims=True)       # (tile, 1)

    # Every (teacher_view, pair) term has identical weight in loss_d, so a
    # single resident scalar accumulator suffices (no per-pair slabs).
    loss_ref[...] = loss_ref[...] + jnp.sum(ce * validf)


def _dino_patch_losses(teacher_output, student_output, center, ncrops,
                       t_temp, s_temp):
    NT, D = teacher_output.shape
    B = NT // 2
    NS = student_output.shape[0]
    assert NS == ncrops * B, "per-crop student batch must match per-view teacher batch"
    NV = ncrops - 1

    t3 = teacher_output.reshape(2, B, D)
    s3 = student_output.reshape(ncrops, B, D)

    tile = _pick_tile(B, D, 5)       # teacher(2) + student(2) double buffers + q scratch
    nrb = pl.cdiv(B, tile)

    kernel = functools.partial(
        _loss_d_kernel,
        inv_t_temp=1.0 / float(t_temp),
        inv_s_temp=1.0 / float(s_temp),
        rows=B, tile=tile)

    def _student_idx(iq, i, v):
        # Paired student crop for teacher view iq, pair slot v (skip v == iq).
        pair = jnp.where(v >= iq, v + 1, v)
        return (pair, i, 0)

    loss_sum, colsum = pl.pallas_call(
        kernel,
        out_shape=(jax.ShapeDtypeStruct((8, 128), jnp.float32),
                   jax.ShapeDtypeStruct((1, D), jnp.float32)),
        grid=(2, nrb, NV),
        in_specs=[
            pl.BlockSpec((1, tile, D), lambda iq, i, v: (iq, i, 0)),
            pl.BlockSpec((1, tile, D), _student_idx),
            pl.BlockSpec((1, D), lambda iq, i, v: (0, 0)),
        ],
        out_specs=(
            pl.BlockSpec((8, 128), lambda iq, i, v: (0, 0)),
            pl.BlockSpec((1, D), lambda iq, i, v: (0, 0)),
        ),
        scratch_shapes=[pltpu.VMEM((tile, D), jnp.float32)],
        compiler_params=pltpu.CompilerParams(
            # Accumulator outputs keep a constant block index across every grid
            # axis, so the whole grid must run sequentially.
            dimension_semantics=("arbitrary", "arbitrary", "arbitrary"),
            vmem_limit_bytes=_VMEM_LIMIT),
    )(t3, s3, center)

    loss_d = loss_sum[0, 0] / (B * 2 * NV)       # mean per pair, / n_loss_terms
    batch_center = colsum / NT
    return loss_d, batch_center


# ----------------------------------------------------------------------------
# Kernel 2: batched centroid-level CE (loss_c + loss_nn) + teacher colsum
# ----------------------------------------------------------------------------
def _stacked_ce_kernel(t_ref, s_ref, w_ref, c_ref, o_ref, tcs_ref,
                       *, inv_t_temp, inv_s_temp, rows, tile):
    i = pl.program_id(1)
    row_ids = lax.broadcasted_iota(jnp.int32, (tile, 1), 0) + i * tile
    valid = row_ids < rows

    @pl.when(i == 0)
    def _():
        o_ref[...] = jnp.zeros_like(o_ref)
        tcs_ref[...] = jnp.zeros_like(tcs_ref)

    t_raw = jnp.where(valid, t_ref[0].astype(jnp.float32), 0.0)         # (tile, D)
    tcs_ref[...] = tcs_ref[...] + jnp.sum(t_raw, axis=0, keepdims=True)[None]

    t = (t_raw - c_ref[...]) * inv_t_temp
    t = t - jnp.max(t, axis=-1, keepdims=True)
    e = jnp.exp(t)
    q = e * pl.reciprocal(jnp.sum(e, axis=-1, keepdims=True), approx=True)

    s_raw = jnp.where(valid, s_ref[0].astype(jnp.float32), 0.0)
    s = s_raw * inv_s_temp
    s_max = jnp.max(s, axis=-1, keepdims=True)
    lse = jnp.log(jnp.sum(jnp.exp(s - s_max), axis=-1, keepdims=True)) + s_max
    ce = -jnp.sum(q * (s - lse), axis=-1, keepdims=True)                # (tile, 1)

    w = jnp.where(valid, w_ref[0].astype(jnp.float32), 0.0)             # (tile, 1)
    o_ref[...] = o_ref[...] + jnp.sum(ce * w)


def _stacked_ce_sums(t_stack, s_stack, w_stack, center, t_temp, s_temp):
    P, M, D = t_stack.shape
    tile = _pick_tile(M, D, 4)       # teacher + student double buffers
    nrb = pl.cdiv(M, tile)

    kernel = functools.partial(
        _stacked_ce_kernel,
        inv_t_temp=1.0 / float(t_temp),
        inv_s_temp=1.0 / float(s_temp),
        rows=M, tile=tile)

    sums, tcolsum = pl.pallas_call(
        kernel,
        out_shape=(jax.ShapeDtypeStruct((P, 8, 128), jnp.float32),
                   jax.ShapeDtypeStruct((P, 1, D), jnp.float32)),
        grid=(P, nrb),
        in_specs=[
            pl.BlockSpec((1, tile, D), lambda p, i: (p, i, 0)),
            pl.BlockSpec((1, tile, D), lambda p, i: (p, i, 0)),
            pl.BlockSpec((1, tile, 1), lambda p, i: (p, i, 0)),
            pl.BlockSpec((1, D), lambda p, i: (0, 0)),
        ],
        out_specs=(
            pl.BlockSpec((1, 8, 128), lambda p, i: (p, 0, 0)),
            pl.BlockSpec((1, 1, D), lambda p, i: (p, 0, 0)),
        ),
        compiler_params=pltpu.CompilerParams(
            dimension_semantics=("parallel", "arbitrary"),
            vmem_limit_bytes=_VMEM_LIMIT),
    )(t_stack, s_stack, w_stack, center)

    return sums[:, 0, 0], tcolsum[:, 0, :]        # (P,), (P, D)


# ----------------------------------------------------------------------------
# Kernel 3: tiled column sum (fallback path for EMA center)
# ----------------------------------------------------------------------------
def _colsum_kernel(x_ref, o_ref, *, rows, tile):
    i = pl.program_id(0)
    row_ids = lax.broadcasted_iota(jnp.int32, (tile, 1), 0) + i * tile
    x = jnp.where(row_ids < rows, x_ref[...].astype(jnp.float32), 0.0)

    @pl.when(i == 0)
    def _():
        o_ref[...] = jnp.zeros_like(o_ref)
    o_ref[...] = o_ref[...] + jnp.sum(x, axis=0, keepdims=True)


def _column_sum(x):
    N, D = x.shape
    tile = _pick_tile(N, D, 2)
    nrb = pl.cdiv(N, tile)
    kernel = functools.partial(_colsum_kernel, rows=N, tile=tile)
    return pl.pallas_call(
        kernel,
        out_shape=jax.ShapeDtypeStruct((1, D), jnp.float32),
        grid=(nrb,),
        in_specs=[pl.BlockSpec((tile, D), lambda i: (i, 0))],
        out_specs=pl.BlockSpec((1, D), lambda i: (0, 0)),
        compiler_params=pltpu.CompilerParams(
            dimension_semantics=("arbitrary",),
            vmem_limit_bytes=_VMEM_LIMIT),
    )(x)


# ----------------------------------------------------------------------------
# CrIBoLoss (functional JAX port)
# ----------------------------------------------------------------------------
class CrIBoLoss:
    def __init__(self, out_dim, out_dim_c, ncrops, warmup_teacher_temp,
                 warmup_teacher_temp_c, teacher_temp, teacher_temp_c,
                 warmup_teacher_temp_epochs, nepochs,
                 student_temp=0.1, student_temp_c=0.1,
                 center_momentum=0.9, center_momentum_c=0.9):
        self.student_temp = student_temp
        self.student_temp_c = student_temp_c
        self.center_momentum = center_momentum
        self.center_momentum_c = center_momentum_c
        self.ncrops = ncrops
        # NOTE: center/center_c are mutated as Python attributes (like the
        # torch buffers); thread them explicitly as state under jax.jit/scan.
        self.center = jnp.zeros((1, out_dim), jnp.float32)
        self.center_c = jnp.zeros((1, out_dim_c), jnp.float32)
        self.teacher_temp_schedule = np.concatenate((
            np.linspace(warmup_teacher_temp, teacher_temp, warmup_teacher_temp_epochs),
            np.ones(nepochs - warmup_teacher_temp_epochs) * teacher_temp))
        self.teacher_temp_schedule_c = np.concatenate((
            np.linspace(warmup_teacher_temp_c, teacher_temp_c, warmup_teacher_temp_epochs),
            np.ones(nepochs - warmup_teacher_temp_epochs) * teacher_temp_c))

    def __call__(self, student_output, teacher_output, epoch,
                 student_centroids, teacher_centroids, bootstrap_centroid_mask,
                 teacher_nn_centroids, centroids_indices_knn,
                 teacher_nn2_centroids, centroids_indices_knn2,
                 bootstrap_centroid_mask2):
        temp = float(self.teacher_temp_schedule[epoch])
        temp_c = float(self.teacher_temp_schedule_c[epoch])

        # ----- loss_d : one fused kernel (also yields raw teacher column-sum) -----
        loss_d, batch_center = _dino_patch_losses(
            teacher_output, student_output, self.center, self.ncrops,
            temp, self.student_temp)

        # ----- loss_c / loss_nn : one batched kernel over all centroid pairs -----
        Mt = student_centroids.shape[0] // 2
        s_v1, s_v2 = student_centroids[:Mt], student_centroids[Mt:]
        t_v1, t_v2 = teacher_centroids[:Mt], teacher_centroids[Mt:]
        ones = jnp.ones((Mt, 1), jnp.float32)

        teachers = [t_v1, t_v2]
        students = [s_v2, s_v1]
        weights = [ones, ones]
        use_nn = epoch >= 1
        if use_nn:
            teachers += [teacher_nn_centroids[0], teacher_nn2_centroids[1]]
            students += [s_v2, s_v1]
            weights += [
                bootstrap_centroid_mask.astype(jnp.float32).reshape(Mt, 1),
                bootstrap_centroid_mask2.astype(jnp.float32).reshape(Mt, 1),
            ]

        sums, tcolsums = _stacked_ce_sums(
            jnp.stack(teachers), jnp.stack(students), jnp.stack(weights),
            self.center_c, temp_c, self.student_temp_c)

        loss_c = (sums[0] + sums[1]) / (2.0 * Mt)
        if use_nn:
            nb = bootstrap_centroid_mask.astype(jnp.float32).sum()
            safe_nb = jnp.maximum(nb, 1.0)
            # Matches reference: both nn terms are divided by mask1's count.
            loss_nn = jnp.where(nb > 0.0, (sums[2] + sums[3]) / safe_nb / 2.0,
                                jnp.float32(0.0))
        else:
            loss_nn = jnp.float32(0.0)

        # Teacher-centroid column-sum was fused into the centroid kernel
        # (pairs 0 and 1 are exactly the two teacher_centroids halves).
        batch_center_c = (tcolsums[0] + tcolsums[1])[None, :] / (2.0 * Mt)
        self.update_center(teacher_output, teacher_centroids,
                           batch_center=batch_center,
                           batch_center_c=batch_center_c)
        return loss_d, loss_c, loss_nn

    def update_center(self, teacher_output, teacher_centroids=None,
                      batch_center=None, batch_center_c=None):
        # TODO(synk): torch.distributed.all_reduce emulated with world_size == 1.
        if batch_center is None:
            batch_center = _column_sum(teacher_output) / teacher_output.shape[0]
        self.center = (self.center * self.center_momentum
                       + batch_center * (1 - self.center_momentum))
        if teacher_centroids is not None:
            if batch_center_c is None:
                batch_center_c = (_column_sum(teacher_centroids)
                                  / teacher_centroids.shape[0])
            self.center_c = (self.center_c * self.center_momentum_c
                             + batch_center_c * (1 - self.center_momentum_c))


# ----------------------------------------------------------------------------
# Example run
# ----------------------------------------------------------------------------
if __name__ == "__main__":
    out_dim = 128
    out_dim_c = 128
    ncrops = 4
    B = 8          # per-view batch
    M = 8          # centroids per view
    epoch = 2

    loss_fn = CrIBoLoss(
        out_dim=out_dim, out_dim_c=out_dim_c, ncrops=ncrops,
        warmup_teacher_temp=0.04, warmup_teacher_temp_c=0.04,
        teacher_temp=0.07, teacher_temp_c=0.07,
        warmup_teacher_temp_epochs=5, nepochs=10)

    key = jax.random.PRNGKey(0)
    ks = jax.random.split(key, 8)
    student_output = jax.random.normal(ks[0], (ncrops * B, out_dim), jnp.float32)
    teacher_output = jax.random.normal(ks[1], (2 * B, out_dim), jnp.float32)
    student_centroids = jax.random.normal(ks[2], (2 * M, out_dim_c), jnp.float32)
    teacher_centroids = jax.random.normal(ks[3], (2 * M, out_dim_c), jnp.float32)
    teacher_nn_centroids = jax.random.normal(ks[4], (2, M, out_dim_c), jnp.float32)
    teacher_nn2_centroids = jax.random.normal(ks[5], (2, M, out_dim_c), jnp.float32)
    bootstrap_centroid_mask = (jnp.arange(M) % 2 == 0)
    bootstrap_centroid_mask2 = (jnp.arange(M) % 3 == 0)
    centroids_indices_knn = jnp.arange(M, dtype=jnp.int32)    # unused by forward
    centroids_indices_knn2 = jnp.arange(M, dtype=jnp.int32)   # unused by forward

    loss_d, loss_c, loss_nn = loss_fn(
        student_output, teacher_output, epoch,
        student_centroids, teacher_centroids, bootstrap_centroid_mask,
        teacher_nn_centroids, centroids_indices_knn,
        teacher_nn2_centroids, centroids_indices_knn2, bootstrap_centroid_mask2)

    jax.block_until_ready((loss_d, loss_c, loss_nn,
                           loss_fn.center, loss_fn.center_c))
    print("KERNEL_OK")
</pallas_src>

<mosaic_0001>
module attributes {stable_mosaic.version = 11 : i64} {
  func.func @_loss_d_kernel(%arg0: i32, %arg1: i32, %arg2: i32, %arg3: memref<1x8x128xf32, #tpu.memory_space<vmem>>, %arg4: memref<1x8x128xf32, #tpu.memory_space<vmem>>, %arg5: memref<1x128xf32, #tpu.memory_space<vmem>>, %arg6: memref<8x128xf32, #tpu.memory_space<vmem>>, %arg7: memref<1x128xf32, #tpu.memory_space<vmem>>, %arg8: memref<8x128xf32, #tpu.memory_space<vmem>>) attributes {dimension_semantics = [#tpu.dimension_semantics<arbitrary>, #tpu.dimension_semantics<arbitrary>, #tpu.dimension_semantics<arbitrary>], iteration_bounds = array<i64: 2, 1, 3>, scalar_prefetch = 0 : i64, scratch_operands = 1 : i64, tpu.core_type = #tpu.core_type<tc>, window_params = [{transform_indices = @transform_0, window_bounds = array<i64: 1, 8, 128>}, {transform_indices = @transform_1, window_bounds = array<i64: 1, 8, 128>}, {pipeline_mode = #tpu.pipeline_mode<synchronous>, transform_indices = @transform_2, window_bounds = array<i64: 1, 128>}, {pipeline_mode = #tpu.pipeline_mode<synchronous>, transform_indices = @transform_3, window_bounds = array<i64: 8, 128>}, {pipeline_mode = #tpu.pipeline_mode<synchronous>, transform_indices = @transform_4, window_bounds = array<i64: 1, 128>}]} {
    %0 = tpu.iota {dimensions = array<i32: 0>} : vector<8x1xi32>
    %c8_i32 = arith.constant 8 : i32
    %1 = arith.muli %arg1, %c8_i32 : i32
    %2 = vector.broadcast %1 : i32 to vector<8x1xi32>
    %3 = arith.addi %0, %2 : vector<8x1xi32>
    %c8_i32_0 = arith.constant 8 : i32
    %4 = vector.broadcast %c8_i32_0 : i32 to vector<8x1xi32>
    %5 = arith.cmpi slt, %3, %4 : vector<8x1xi32>
    %6 = arith.extui %5 : vector<8x1xi1> to vector<8x1xi32>
    %7 = arith.sitofp %6 : vector<8x1xi32> to vector<8x1xf32>
    %c0_i32 = arith.constant 0 : i32
    %8 = arith.cmpi eq, %arg0, %c0_i32 : i32
    %c0_i32_1 = arith.constant 0 : i32
    %9 = arith.cmpi eq, %arg1, %c0_i32_1 : i32
    %10 = arith.andi %8, %9 : i1
    %c0_i32_2 = arith.constant 0 : i32
    %11 = arith.cmpi eq, %arg2, %c0_i32_2 : i32
    %12 = arith.andi %10, %11 : i1
    %13 = arith.extui %12 : i1 to i32
    %c0_i32_3 = arith.constant 0 : i32
    %14 = arith.cmpi ne, %13, %c0_i32_3 : i32
    scf.if %14 {
      %cst_20 = arith.constant 0.000000e+00 : f32
      %52 = vector.broadcast %cst_20 : f32 to vector<8x128xf32>
      %c0_21 = arith.constant 0 : index
      %c0_22 = arith.constant 0 : index
      %53 = vector.load %arg6[%c0_21, %c0_22] : memref<8x128xf32, #tpu.memory_space<vmem>>, vector<8x128xf32>
      tpu.vector_store %arg6[%c0_21, %c0_22], %52 {strides = array<i32>} : memref<8x128xf32, #tpu.memory_space<vmem>>, vector<8x128xf32>,
      %cst_23 = arith.constant 0.000000e+00 : f32
      %54 = vector.broadcast %cst_23 : f32 to vector<1x128xf32>
      %c0_24 = arith.constant 0 : index
      %c0_25 = arith.constant 0 : index
      %55 = vector.load %arg7[%c0_24, %c0_25] : memref<1x128xf32, #tpu.memory_space<vmem>>, vector<1x128xf32>
      tpu.vector_store %arg7[%c0_24, %c0_25], %54 {strides = array<i32>} : memref<1x128xf32, #tpu.memory_space<vmem>>, vector<1x128xf32>,
    } else {
    }
    %c0_i32_4 = arith.constant 0 : i32
    %15 = arith.cmpi eq, %arg2, %c0_i32_4 : i32
    %16 = arith.extui %15 : i1 to i32
    %c0_i32_5 = arith.constant 0 : i32
    %17 = arith.cmpi ne, %16, %c0_i32_5 : i32
    scf.if %17 {
      %c0_20 = arith.constant 0 : index
      %c0_21 = arith.constant 0 : index
      %c0_22 = arith.constant 0 : index
      %52 = vector.load %arg3[%c0_20, %c0_21, %c0_22] : memref<1x8x128xf32, #tpu.memory_space<vmem>>, vector<1x8x128xf32>
      %53 = vector.shape_cast %52 : vector<1x8x128xf32> to vector<8x128xf32>
      %cst_23 = arith.constant 0.000000e+00 : f32
      %54 = vector.shape_cast %5 : vector<8x1xi1> to vector<8x1xi1>
      %55 = vector.broadcast %54 : vector<8x1xi1> to vector<8x128xi1>
      %56 = vector.broadcast %cst_23 : f32 to vector<8x128xf32>
      %57 = arith.select %55, %53, %56 : vector<8x128xi1>, vector<8x128xf32>
      %c0_24 = arith.constant 0 : index
      %c0_25 = arith.constant 0 : index
      %58 = vector.load %arg7[%c0_24, %c0_25] : memref<1x128xf32, #tpu.memory_space<vmem>>, vector<1x128xf32>
      %cst_26 = arith.constant dense<0.000000e+00> : vector<128xf32>
      %59 = vector.multi_reduction <add>, %57, %cst_26 [0] : vector<8x128xf32> to vector<128xf32>
      %60 = vector.shape_cast %59 : vector<128xf32> to vector<1x128xf32>
      %61 = arith.addf %58, %60 : vector<1x128xf32>
      %c0_27 = arith.constant 0 : index
      %c0_28 = arith.constant 0 : index
      %62 = vector.load %arg7[%c0_27, %c0_28] : memref<1x128xf32, #tpu.memory_space<vmem>>, vector<1x128xf32>
      tpu.vector_store %arg7[%c0_27, %c0_28], %61 {strides = array<i32>} : memref<1x128xf32, #tpu.memory_space<vmem>>, vector<1x128xf32>,
      %c0_29 = arith.constant 0 : index
      %c0_30 = arith.constant 0 : index
      %63 = vector.load %arg5[%c0_29, %c0_30] : memref<1x128xf32, #tpu.memory_space<vmem>>, vector<1x128xf32>
      %64 = vector.broadcast %63 : vector<1x128xf32> to vector<8x128xf32>
      %65 = arith.subf %57, %64 : vector<8x128xf32>
      %cst_31 = arith.constant 18.181818 : f32
      %66 = vector.broadcast %cst_31 : f32 to vector<8x128xf32>
      %67 = arith.mulf %65, %66 : vector<8x128xf32>
      %cst_32 = arith.constant dense<0xFF800000> : vector<8xf32>
      %68 = vector.multi_reduction <maximumf>, %67, %cst_32 [1] : vector<8x128xf32> to vector<8xf32>
      %69 = vector.shape_cast %68 : vector<8xf32> to vector<8x1xf32>
      %70 = vector.broadcast %69 : vector<8x1xf32> to vector<8x128xf32>
      %71 = arith.subf %67, %70 : vector<8x128xf32>
      %72 = math.exp %71 : vector<8x128xf32>
      %cst_33 = arith.constant dense<0.000000e+00> : vector<8xf32>
      %73 = vector.multi_reduction <add>, %72, %cst_33 [1] : vector<8x128xf32> to vector<8xf32>
      %74 = vector.shape_cast %73 : vector<8xf32> to vector<8x1xf32>
      %75 = tpu.reciprocal %74 {approx = true} : vector<8x1xf32> -> vector<8x1xf32>
      %76 = vector.broadcast %75 : vector<8x1xf32> to vector<8x128xf32>
      %77 = arith.mulf %72, %76 : vector<8x128xf32>
      %c0_34 = arith.constant 0 : index
      %c0_35 = arith.constant 0 : index
      %78 = vector.load %arg8[%c0_34, %c0_35] : memref<8x128xf32, #tpu.memory_space<vmem>>, vector<8x128xf32>
      tpu.vector_store %arg8[%c0_34, %c0_35], %77 {strides = array<i32>} : memref<8x128xf32, #tpu.memory_space<vmem>>, vector<8x128xf32>,
    } else {
    }
    %c0 = arith.constant 0 : index
    %c0_6 = arith.constant 0 : index
    %c0_7 = arith.constant 0 : index
    %18 = vector.load %arg4[%c0, %c0_6, %c0_7] : memref<1x8x128xf32, #tpu.memory_space<vmem>>, vector<1x8x128xf32>
    %19 = vector.shape_cast %18 : vector<1x8x128xf32> to vector<8x128xf32>
    %cst = arith.constant 0.000000e+00 : f32
    %20 = vector.shape_cast %5 : vector<8x1xi1> to vector<8x1xi1>
    %21 = vector.broadcast %20 : vector<8x1xi1> to vector<8x128xi1>
    %22 = vector.broadcast %cst : f32 to vector<8x128xf32>
    %23 = arith.select %21, %19, %22 : vector<8x128xi1>, vector<8x128xf32>
    %cst_8 = arith.constant 1.000000e+01 : f32
    %24 = vector.broadcast %cst_8 : f32 to vector<8x128xf32>
    %25 = arith.mulf %23, %24 : vector<8x128xf32>
    %cst_9 = arith.constant dense<0xFF800000> : vector<8xf32>
    %26 = vector.multi_reduction <maximumf>, %25, %cst_9 [1] : vector<8x128xf32> to vector<8xf32>
    %27 = vector.shape_cast %26 : vector<8xf32> to vector<8x1xf32>
    %28 = vector.broadcast %27 : vector<8x1xf32> to vector<8x128xf32>
    %29 = arith.subf %25, %28 : vector<8x128xf32>
    %30 = math.exp %29 : vector<8x128xf32>
    %cst_10 = arith.constant dense<0.000000e+00> : vector<8xf32>
    %31 = vector.multi_reduction <add>, %30, %cst_10 [1] : vector<8x128xf32> to vector<8xf32>
    %32 = vector.shape_cast %31 : vector<8xf32> to vector<8x1xf32>
    %33 = math.log %32 : vector<8x1xf32>
    %34 = arith.addf %33, %27 : vector<8x1xf32>
    %c0_11 = arith.constant 0 : index
    %c0_12 = arith.constant 0 : index
    %35 = vector.load %arg8[%c0_11, %c0_12] : memref<8x128xf32, #tpu.memory_space<vmem>>, vector<8x128xf32>
    %36 = vector.broadcast %34 : vector<8x1xf32> to vector<8x128xf32>
    %37 = arith.subf %25, %36 : vector<8x128xf32>
    %38 = arith.mulf %35, %37 : vector<8x128xf32>
    %cst_13 = arith.constant dense<0.000000e+00> : vector<8xf32>
    %39 = vector.multi_reduction <add>, %38, %cst_13 [1] : vector<8x128xf32> to vector<8xf32>
    %40 = vector.shape_cast %39 : vector<8xf32> to vector<8x1xf32>
    %cst_14 = arith.constant 0.000000e+00 : f32
    %41 = vector.broadcast %cst_14 : f32 to vector<8x1xf32>
    %42 = arith.subf %41, %40 : vector<8x1xf32>
    %c0_15 = arith.constant 0 : index
    %c0_16 = arith.constant 0 : index
    %43 = vector.load %arg6[%c0_15, %c0_16] : memref<8x128xf32, #tpu.memory_space<vmem>>, vector<8x128xf32>
    %44 = arith.mulf %42, %7 : vector<8x1xf32>
    %45 = vector.shape_cast %44 : vector<8x1xf32> to vector<1x8x1xf32>
    %cst_17 = arith.constant dense<0.000000e+00> : vector<1xf32>
    %46 = vector.multi_reduction <add>, %45, %cst_17 [1, 2] : vector<1x8x1xf32> to vector<1xf32>
    %47 = vector.shape_cast %46 : vector<1xf32> to vector<1x1x1xf32>
    %48 = vector.extract %47[0, 0, 0] : f32 from vector<1x1x1xf32>
    %49 = vector.broadcast %48 : f32 to vector<8x128xf32>
    %50 = arith.addf %43, %49 : vector<8x128xf32>
    %c0_18 = arith.constant 0 : index
    %c0_19 = arith.constant 0 : index
    %51 = vector.load %arg6[%c0_18, %c0_19] : memref<8x128xf32, #tpu.memory_space<vmem>>, vector<8x128xf32>
    tpu.vector_store %arg6[%c0_18, %c0_19], %50 {strides = array<i32>} : memref<8x128xf32, #tpu.memory_space<vmem>>, vector<8x128xf32>,
    return
  }
  func.func @transform_0(%arg0: i32, %arg1: i32, %arg2: i32) -> (i32, i32, i32) {
    %c0_i32 = arith.constant 0 : i32
    %c0_i32_0 = arith.constant 0 : i32
    return %arg0, %arg1, %c0_i32 : i32, i32, i32
  }
  func.func @transform_1(%arg0: i32, %arg1: i32, %arg2: i32) -> (i32, i32, i32) {
    %0 = arith.cmpi sge, %arg2, %arg0 : i32
    %c1_i32 = arith.constant 1 : i32
    %1 = arith.addi %arg2, %c1_i32 : i32
    %2 = arith.select %0, %1, %arg2 : i32
    %c0_i32 = arith.constant 0 : i32
    %c0_i32_0 = arith.constant 0 : i32
    return %2, %arg1, %c0_i32 : i32, i32, i32
  }
  func.func @transform_2(%arg0: i32, %arg1: i32, %arg2: i32) -> (i32, i32) {
    %c0_i32 = arith.constant 0 : i32
    %c0_i32_0 = arith.constant 0 : i32
    %c0_i32_1 = arith.constant 0 : i32
    return %c0_i32, %c0_i32_0 : i32, i32
  }
  func.func @transform_3(%arg0: i32, %arg1: i32, %arg2: i32) -> (i32, i32) {
    %c0_i32 = arith.constant 0 : i32
    %c0_i32_0 = arith.constant 0 : i32
    %c0_i32_1 = arith.constant 0 : i32
    return %c0_i32, %c0_i32_0 : i32, i32
  }
  func.func @transform_4(%arg0: i32, %arg1: i32, %arg2: i32) -> (i32, i32) {
    %c0_i32 = arith.constant 0 : i32
    %c0_i32_0 = arith.constant 0 : i32
    %c0_i32_1 = arith.constant 0 : i32
    return %c0_i32, %c0_i32_0 : i32, i32
  }
}

</mosaic_0001>

<bundles_post_ra>
// kernel: tpu_custom_call.1
= control target key start
LH: loop header
LB: loop body
LE: loop exit
PB: predicated region body
PF: predicated region fallthrough
CT: control target
= control target key end

     0   :  { %s1187_s0 = inlined_call_operand.hbm [shape: f32[2,8,128], index: 0, kind: input, shape index: {}]   ;;  %s1188_s1 = inlined_call_operand.hbm [shape: f32[4,8,128], index: 1, kind: input, shape index: {}]   ;;  %s1189_s2 = inlined_call_operand.vmem [shape: f32[1,128], index: 2, kind: input, shape index: {}]   ;;  %s1190_s3 = inlined_call_operand.hbm [shape: f32[8,128], index: 3, kind: output, shape index: {0}]   ;;  %s1191_s4 = inlined_call_operand.hbm [shape: f32[1,128], index: 4, kind: output, shape index: {1}]  }
   0x1   :  { %1200 = sst [smem:[#allocation18_spill]] %s1187_s0 }
   0x2   :  { %10 = vsyncpa [#allocation4], 0 }
   0x3   :  { %12 = vsyncpa [#allocation4 + $0x1], 0 }
   0x4   :  { %13 = vsyncpa [#allocation7], 0 }
   0x5   :  { %15 = vsyncpa [#allocation7 + $0x1], 0 }
   0x6   :  { %16 = vsyncpa [#allocation5], 0 }
   0x7   :  { %17 = vsyncpa [#allocation10], 0  ;;  %s873_s15 = smov 0   ;;  %s875_s16 = smov 0  }
   0x8   :  { %s877_s17 = smov 0   ;;  %s879_s18 = smov 0  }
   0x9   :  { %s881_s19 = smov 0   ;;  %s883_s20 = smov 0  }
   0xa   :  { %s885_s21 = smov 0   ;;  %s887_s22 = smov 0  }
   0xb   :  { %s889_s23 = smov 0   ;;  %s891_s24 = smov 0  }
   0xc   :  { %s893_s25 = smov 0  }
   0xd LB: > { %1201 = sst [smem:[#allocation15_spill]] %s833_s23  ;;  %s1195_s26 = sadd.s32 4294967295, %s841_s25   ;;  %s841_s25 = sphi %s893_s25, %s23_s25   ;;  %s837_s24 = sphi %s891_s24, %s1231_s24   ;;  %s833_s23 = sphi %s889_s23, %s1230_s23   ;;  %s829_s22 = sphi %s887_s22, %s1221_s22   ;;  %s825_s21 = sphi %s885_s21, %s1220_s21   ;;  %s821_s20 = sphi %s883_s20, %s1229_s20   ;;  %s817_s19 = sphi %s881_s19, %s1228_s19   ;;  %s813_s18 = sphi %s879_s18, %s1227_s18   ;;  %s809_s17 = sphi %s877_s17, %s1226_s17   ;;  %s805_s16 = sphi %s875_s16, %s1225_s16   ;;  %s801_s15 = sphi %s873_s15, %s1224_s15  }
   0xe   : > { %1202 = sst [smem:[#allocation16_spill]] %s837_s24  ;;  %s42_s27 = sadd.s32 1, %s837_s24 }
   0xf   : > { %s51_s28 = sadd.s32 1, %s821_s20  ;;  %p58_p0 = scmp.ne.s32.totalorder %s821_s20, %s817_s19 }
  0x10   : > { %p1193_p1 = scmp.eq.s32.totalorder %s841_s25, 0  ;;  %p64_p2 = scmp.ne.s32.totalorder %s817_s19, %s813_s18 }
  0x11   : > { %p935_p3 = scmp.eq.s32.totalorder %s1195_s26, 0  ;;  %p1192_p5 = scmp.lt.s32.totalorder %s841_s25, 6 }
  0x12   : > { %p60_p4 = por %p1193_p1, %p58_p0  ;;  %s188_s5 = sand.u32 1, %s821_s20  }
  0x13   : > { %p944_p6 = por %p935_p3, %p64_p2  ;;  %s485_s6 = sshll.u32 %s188_s5, 3 }
  0x14   : > { %s486_s7 = sshll.u32 %s837_s24, 7  ;;  %s1205_s0 = sld [smem:[#allocation18_spill]] }
  0x15   : > { %s1204_s30 = scalar_select %p944_p6, 1, 0 }
  0x16   : > { %s192_s11 = scalar_lea.vmem [#allocation3], %s485_s6  ;;  %p959_p7 = pnand %p1192_p5, %p60_p4 }
  0x17   : > { %s200_s12 = sshll.u32 %s192_s11, 4  ;;  %s189_s14 = scalar_lea.sflag [#allocation4], %s188_s5  ;;  %s955_s12 = int_to_ptr.vmem [resolvable:$true] %s200_s12 }
  0x18   : > { %p629_p11 = pneg %p959_p7 }
  0x1a   : > { %s953_s10 = scalar_lea.hbm %s1205_s0, %s486_s7  ;;  %s632_s8 = scalar_lea.hbm %s1205_s0, 256 }
  0x1b   : > { %s627_s18 = scalar_lea.hbm %s953_s10, 128  ;;  %p633_p0 = scmp.lt.u32.totalorder %s953_s10, %s1205_s0 }
  0x1c   : > { %p628_p10 = scmp.ne.s32.totalorder %s953_s10, %s627_s18  ;;  %p634_p2 = scmp.lt.u32.totalorder %s632_s8, %s627_s18 }
  0x1d   : > { %p636_p5 = scmp.lt.u32.totalorder %s627_s18, %s953_s10 }
  0x1e   : > { %p630_p12 = pnand %p629_p11, %p628_p10  ;;  %p635_p4 = por %p634_p2, %p633_p0 }
  0x20   : > { %p631_p13 = pneg %p630_p12  ;;  %p637_p1 = por %p636_p5, %p635_p4 }
  0x22   : > { %p638_p8 = pnand %p637_p1, %p631_p13 }
  0x24   : > { %641 = shalt.err (!%p638_p8)
}
  0x25   : > { %s642_s5 = scalar_lea.vmem %s955_s12, 128  ;;  %s843_s6 = smov [#allocation3]  }
  0x26   : > { %p643_p10 = scmp.ne.s32.totalorder %s955_s12, %s642_s5  ;;  %s647_s7 = sshll.u32 %s843_s6, 4  ;;  %s648_s7 = int_to_ptr.vmem [resolvable:$false] %s647_s7 }
  0x27   : > { %s649_s9 = scalar_lea.vmem %s648_s7, 256  ;;  %p650_p6 = scmp.lt.s32.totalorder %s955_s12, %s648_s7 }
  0x28   : > { %p645_p12 = pnand %p643_p10, %p629_p11  ;;  %p651_p0 = scmp.lt.s32.totalorder %s649_s9, %s642_s5 }
  0x2a   : > { %p646_p9 = pneg %p645_p12  ;;  %p652_p2 = por %p651_p0, %p650_p6 }
  0x2c   : > { %p653_p5 = pnand %p652_p2, %p646_p9 }
  0x2e   : > { %656 = shalt.err (!%p653_p5)
}
  0x2f   : > { %519 = dma.hbm_to_vmem [thread:$0]  (!%p959_p7), %s953_s10, 128, %s955_s12, %s189_s14  }
  0x30   : > { %p1207_p1 = scmp.lt.s32.totalorder %s841_s25, 7  ;;  %p1208_p6 = scmp.ge.s32.totalorder %s841_s25, 1 }
  0x31   : > { %s35_s18 = sadd.s32 1, %s833_s23  ;;  %p74_p9 = scmp.ge.s32.totalorder %s833_s23, %s837_s24 }
  0x32   : > { %p994_p8 = pnand %p1208_p6, %p1207_p1  ;;  %p36_p11 = scmp.ge.s32.totalorder %s35_s18, 3 }
  0x33   : > { %s85_s8 = sadd.s32 1, %s809_s17  ;;  %p92_p7 = scmp.ne.s32.totalorder %s809_s17, %s805_s16 }
  0x34   : > { %s76_s11 = scalar_select %p74_p9, %s35_s18, %s833_s23 }
  0x35   : > { %s1233_s18 = smov (%p36_p11, %s35_s18), 0  ;;  %s1235_s27 = smov (!%p36_p11, %s42_s27), %s837_s24 }
  0x36   : > { %s78_s10 = sadd.s32 1, %s1233_s18  ;;  %p44_p13 = scmp.ge.s32.totalorder %s1235_s27, 2 }
  0x37   : > { %p98_p4 = scmp.ne.s32.totalorder %s805_s16, %s801_s15  ;;  %p1210_p10 = scmp.eq.s32.totalorder %s841_s25, 0 }
  0x38   : > { %s207_s14 = sand.u32 1, %s809_s17   ;;  %s1237_s27 = smov (%p44_p13, %s1235_s27), 0 }
  0x39   : > { %p1015_p12 = por %p92_p7, %p1210_p10  ;;  %1212 = sst [smem:[#allocation17_spill]] %s1237_s27 }
  0x3a   : > { %p1024_p0 = por %p98_p4, %p935_p3  ;;  %s46_s6 = ssub.s32 %s837_s24, %s1237_s27 }
  0x3b   : > { %p77_p2 = scmp.ge.s32.totalorder %s1233_s18, %s1237_s27  ;;  %p49_p5 = scmp.eq.s32.totalorder %s46_s6, 0 }
  0x3c   : > { %s1213_s5 = scalar_select %p1024_p0, 1, 0 }
  0x3d   : > { %s487_s15 = sshll.u32 %s207_s14, 3  ;;  %s1239_s10 = smov (!%p77_p2, %s78_s10), %s1233_s18 }
  0x3e   : > { %s1036_s7 = scalar_select %p49_p5, %s821_s20, %s51_s28  }
  0x3f   : > { %s80_s9 = ssub.s32 %s76_s11, %s1239_s10  ;;  %s488_s26 = sshll.u32 %s76_s11, 7 }
  0x40   : > { %p83_p1 = scmp.eq.s32.totalorder %s80_s9, 0  ;;  %s1041_s23 = scalar_lea.hbm %s1188_s1, %s488_s26 }
  0x41   : > { %s211_s24 = scalar_lea.vmem [#allocation6], %s487_s15  ;;  %p1214_p3 = scmp.lt.s32.totalorder %s841_s25, 6 }
  0x42   : > { %s222_s27 = sshll.u32 %s211_s24, 4  ;;  %s208_s0 = scalar_lea.sflag [#allocation7], %s207_s14  ;;  %s1046_s27 = int_to_ptr.vmem [resolvable:$true] %s222_s27 }
  0x43   : > { %s1044_s6 = scalar_select %p83_p1, %s809_s17, %s85_s8  }
  0x44   : > { %p1052_p6 = pnand %p1214_p3, %p1015_p12  ;;  %s657_s26 = scalar_lea.hbm %s1041_s23, 128 }
  0x45   : > { %p658_p9 = scmp.ne.s32.totalorder %s1041_s23, %s657_s26  ;;  %s662_s11 = scalar_lea.hbm %s1188_s1, 512 }
  0x46   : > { %p659_p11 = pneg %p1052_p6  ;;  %p663_p4 = scmp.lt.u32.totalorder %s1041_s23, %s1188_s1 }
  0x47   : > { %p664_p10 = scmp.lt.u32.totalorder %s662_s11, %s657_s26  ;;  %p666_p2 = scmp.lt.u32.totalorder %s657_s26, %s1041_s23 }
  0x48   : > { %p660_p7 = pnand %p659_p11, %p658_p9 }
  0x49   : > { %p665_p12 = por %p664_p10, %p663_p4 }
  0x4a   : > { %p661_p13 = pneg %p660_p7 }
  0x4b   : > { %p667_p5 = por %p666_p2, %p665_p12 }
  0x4d   : > { %p668_p1 = pnand %p667_p5, %p661_p13 }
  0x4f   : > { %671 = shalt.err (!%p668_p1)
}
  0x50   : > { %s672_s14 = scalar_lea.vmem %s1046_s27, 128  ;;  %s844_s15 = smov [#allocation6]  }
  0x51   : > { %p673_p3 = scmp.ne.s32.totalorder %s1046_s27, %s672_s14  ;;  %s677_s9 = sshll.u32 %s844_s15, 4  ;;  %s678_s9 = int_to_ptr.vmem [resolvable:$false] %s677_s9 }
  0x52   : > { %s679_s29 = scalar_lea.vmem %s678_s9, 256  ;;  %p680_p0 = scmp.lt.s32.totalorder %s1046_s27, %s678_s9 }
  0x53   : > { %p675_p9 = pnand %p673_p3, %p659_p11  ;;  %p681_p4 = scmp.lt.s32.totalorder %s679_s29, %s672_s14 }
  0x55   : > { %p676_p7 = pneg %p675_p9  ;;  %p682_p10 = por %p681_p4, %p680_p0 }
  0x57   : > { %p683_p12 = pnand %p682_p10, %p676_p7 }
  0x59   : > { %686 = shalt.err (!%p683_p12)
}
  0x5a   : > { %522 = dma.hbm_to_vmem [thread:$0]  (!%p1052_p6), %s1041_s23, 128, %s1046_s27, %s208_s0  }
  0x5b   : > { %231 = sbr.rel (%p994_p8) target bundleno = 1123 (0x463), region = 32  ;;  %s233_s26 = sand.u32 (!%p994_p8), 1, %s817_s19  }
  0x5c   : > { %s490_s24 = sshll.u32 (!%p994_p8), %s233_s26, 3  ;;  %s234_s8 = scalar_lea.sflag (!%p994_p8), [#allocation4], %s233_s26 }
  0x5d   : > { %s237_s11 = scalar_lea.vmem (!%p994_p8), [#allocation3], %s490_s24  ;;  %p1216_p11 = scmp.ne.s32.totalorder (!%p994_p8), %s1204_s30, 0 }
  0x62   : > { %784 = dma.done.wait (%p1216_p11), %s234_s8, 128  }
  0x63   : > { %786 = vsyncadd (%p1216_p11), %s234_s8, 4294967168  ;;  %s242_s28 = sand.u32 1, %s805_s16   ;;  %p1217_p8 = scmp.ne.s32.totalorder %s1213_s5, 0 }
  0x64   : > { %s1089_s10 = sshll.u32 %s242_s28, 3  ;;  %s243_s23 = scalar_lea.sflag [#allocation7], %s242_s28 }
  0x65   : > { %s246_s27 = scalar_lea.vmem [#allocation6], %s1089_s10 }
  0x66   : > { %788 = dma.done.wait (%p1217_p8), %s243_s23, 128  }
  0x67   : > { %790 = vsyncadd (%p1217_p8), %s243_s23, 4294967168  ;;  %p282_p0 = scmp.eq.s32.totalorder %s829_s22, 0  ;;  %p286_p6 = scmp.eq.s32.totalorder %s825_s21, 0 }
  0x69   : > { %p287_p13 = pnand %p286_p6, %p282_p0 }
  0x6a   : > { %v845_v0 = vmov (!%p287_p13), 0.0  }
  0x6b   : > { %290 = sbr.rel (%p287_p13) target bundleno = 114 (0x72), region = 44  ;;  %291 = vst [vmem:[#allocation8] sm:$0xff] (!%p287_p13), %v845_v0  ;;  %292 = vst [vmem:[#allocation9] sm:$0x1] (!%p287_p13), %v845_v0 }
  0x72 PF: > { %p493_p2 = scmp.ne.s32.totalorder %s825_s21, 0 }
  0x73   : > { %v296_v1 = vld [vmem:[%s237_s11] sm:$0xff] (!%p493_p2)  ;;  %v494_v2 = vld [vmem:[%s1189_s2] ss:$0 sm:$0xff] (!%p493_p2) }
  0x74   : > { %295 = sbr.rel (%p493_p2) target bundleno = 433 (0x1b1), region = 48  ;;  %v315_v3 = vsub.f32 (!%p493_p2), %v296_v1, %v494_v2  ;;  %v300_v4 = vrot.slane (!%p493_p2), %v296_v1, 4  ;;  %v299_v10 = vld [vmem:[#allocation9] sm:$0x1] (!%p493_p2) }
  0x76   : > { %v316_v5 = vmul.f32 (!%p493_p2), 18.181818, %v315_v3  ;;  %v301_v6 = vadd.f32 (!%p493_p2), %v300_v4, %v296_v1 }
  0x78   : > { %317 = vmax.xlane.f32.xlu0 (!%p493_p2), %v316_v5  ;;  %v302_v7 = vrot.slane (!%p493_p2), %v301_v6, 2 }
  0x7a   : > { %v303_v8 = vadd.f32 (!%p493_p2), %v302_v7, %v301_v6 }
  0x7c   : > { %v304_v9 = vrot.slane %v303_v8, 1 }
  0x7e   : > { %v305_v11 = vadd.f32 %v304_v9, %v303_v8 }
  0x80   : > { %v306_v12 = vadd.f32 %v305_v11, %v299_v10 }
  0x82   : > { %307 = vst [vmem:[#allocation9] sm:$0x1] %v306_v12 }
 0x105   : > { %v318_v13 = vpop.xlane.xlu0 %317 }
 0x106   : > { %v319_v14 = vsub.f32 %v316_v5, %v318_v13 }
 0x108   : > { %v320_v15 = vmul.f32 1.442695, %v319_v14 }
 0x10a   : > { %619 = vpow2.f32 %v320_v15 }
 0x114   : > { %v620_v16 = vpop.eup %619 }
 0x115   : > { %322 = vadd.xlane.f32.xlu0 %v620_v16 }
 0x1a2   : > { %v323_v17 = vpop.xlane.xlu0 %322 }
 0x1a3   : > { %621 = vrcp.f32 %v323_v17 }
 0x1ad   : > { %v622_v18 = vpop.eup %621 }
 0x1ae   : > { %v325_v19 = vmul.f32 %v622_v18, %v620_v16 }
 0x1b0   : > { %326 = vst [vmem:[#allocation2] sm:$0xff] %v325_v19 }
 0x1b1 PF: > { %v327_v20 = vld [vmem:[%s246_s27] sm:$0xff]  ;;  %vm349_vm0 = vcmask 7168   ;;  %s1218_s21 = sadd.s32 4294967295, %s841_s25   ;;  %s846_s5 = smov [#allocation9]  }
 0x1b2   : > { %v330_v21 = vmul.f32 10.0, %v327_v20  ;;  %p1106_p5 = scmp.eq.s32.totalorder %s1218_s21, 5  ;;  %s381_s0 = sshll.u32 %s846_s5, 4  ;;  %s382_s0 = int_to_ptr.vmem [resolvable:$true] %s381_s0 }
 0x1b3   : > { %s687_s12 = scalar_lea.vmem %s382_s0, 16  ;;  %s693_s14 = scalar_lea.vmem %s382_s0, 32 }
 0x1b4   : > { %331 = vmax.xlane.f32.xlu0 %v330_v21  ;;  %p688_p1 = scmp.ne.s32.totalorder %s382_s0, %s687_s12  ;;  %p694_p7 = scmp.lt.s32.totalorder %s382_s0, %s382_s0 }
 0x1b5   : > { %p695_p4 = scmp.lt.s32.totalorder %s693_s14, %s687_s12 }
 0x1b6   : > { %p689_p3 = pnand %p688_p1, %p1106_p5 }
 0x1b7   : > { %v341_v30 = vld [vmem:[#allocation2] sm:$0xff]  ;;  %p696_p10 = por %p695_p4, %p694_p7 }
 0x1b8   : > { %p690_p9 = pneg %p689_p3 }
 0x1ba   : > { %p697_p12 = pnand %p696_p10, %p690_p9 }
 0x241   : > { %v332_v22 = vpop.xlane.xlu0 %331 }
 0x242   : > { %v333_v23 = vsub.f32 %v330_v21, %v332_v22 }
 0x244   : > { %v334_v24 = vmul.f32 1.442695, %v333_v23 }
 0x246   : > { %623 = vpow2.f32 %v334_v24 }
 0x250   : > { %v624_v25 = vpop.eup %623 }
 0x251   : > { %336 = vadd.xlane.f32.xlu0 %v624_v25 }
 0x2de   : > { %v337_v26 = vpop.xlane.xlu0 %336 }
 0x2df   : > { %625 = vlog2.f32 %v337_v26 }
 0x2e9   : > { %v626_v27 = vpop.eup %625 }
 0x2ea   : > { %v339_v28 = vmul.f32 0.6931472, %v626_v27 }
 0x2ec   : > { %v340_v29 = vadd.f32 %v339_v28, %v332_v22 }
 0x2ee   : > { %v342_v31 = vsub.f32 %v330_v21, %v340_v29 }
 0x2f0   : > { %v343_v32 = vmul.f32 %v342_v31, %v341_v30 }
 0x2f2   : > { %344 = vadd.xlane.f32.xlu1 %v343_v32 }
 0x37f   : > { %v345_v33 = vpop.xlane.xlu1 %344 }
 0x380   : > { %v346_v34 = vsub.f32 0.0, %v345_v33 }
 0x382   : > { %v350_v35 = vsel %vm349_vm0, %v346_v34, 0.0 }
 0x383   : > { %351 = vadd.xlane.f32.xlu1 %v350_v35 }
 0x384   : > { %700 = shalt.err (!%p697_p12)
}
 0x385   : > { %s701_s29 = scalar_lea.hbm %s1191_s4, 16 }
 0x386   : > { %p702_p11 = scmp.ne.s32.totalorder %s1191_s4, %s701_s29  ;;  %p707_p6 = scmp.lt.u32.totalorder %s701_s29, %s1191_s4 }
 0x388   : > { %p703_p8 = pnand %p702_p11, %p1106_p5 }
 0x38a   : > { %p704_p0 = pneg %p703_p8 }
 0x38c   : > { %p709_p13 = pnand %p707_p6, %p704_p0 }
 0x38e   : > { %712 = shalt.err (!%p709_p13)
}
 0x38f   : > { %511 = dma.vmem_to_hbm [thread:$0]  (%p1106_p5), %s382_s0, 16, %s1191_s4, [#allocation10]   ;;  %v347_v43 = vld [vmem:[#allocation8] sm:$0xff] }
 0x390   : > { %s847_s23 = smov [#allocation8]  }
 0x391   : > { %s370_s27 = sshll.u32 %s847_s23, 4  ;;  %s371_s27 = int_to_ptr.vmem [resolvable:$true] %s370_s27 }
 0x392   : > { %s713_s13 = scalar_lea.vmem %s371_s27, 128  ;;  %p720_p9 = scmp.lt.s32.totalorder %s371_s27, %s371_s27 }
 0x393   : > { %p714_p2 = scmp.ne.s32.totalorder %s371_s27, %s713_s13  ;;  %p721_p7 = scmp.lt.s32.totalorder %s713_s13, %s713_s13 }
 0x395   : > { %p715_p1 = pnand %p714_p2, %p1106_p5  ;;  %p722_p4 = por %p721_p7, %p720_p9 }
 0x397   : > { %p716_p3 = pneg %p715_p1 }
 0x399   : > { %p723_p10 = pnand %p722_p4, %p716_p3 }
 0x410   : > { %v352_v36 = vpop.xlane.xlu1 %351 }
 0x411   : > { %v353_v37 = vrot.slane %v352_v36, 4 }
 0x413   : > { %v354_v38 = vadd.f32 %v353_v37, %v352_v36 }
 0x415   : > { %v355_v39 = vrot.slane %v354_v38, 2 }
 0x417   : > { %v356_v40 = vadd.f32 %v355_v39, %v354_v38 }
 0x419   : > { %v357_v41 = vrot.slane %v356_v40, 1 }
 0x41b   : > { %v358_v42 = vadd.f32 %v357_v41, %v356_v40 }
 0x41d   : > { %502 = vpush %v358_v42 }
 0x44e   : > { %s503_s30 = spop %502 }
 0x44f   : > { %v360_v44 = vstv %s503_s30 }
 0x450   : > { %v361_v45 = vadd.f32 %v360_v44, %v347_v43 }
 0x452   : > { %362 = vst [vmem:[#allocation8] sm:$0xff] %v361_v45 }
 0x453   : > { %726 = shalt.err (!%p723_p10)
}
 0x454   : > { %s727_s0 = scalar_lea.hbm %s1190_s3, 128 }
 0x455   : > { %p728_p12 = scmp.ne.s32.totalorder %s1190_s3, %s727_s0  ;;  %p733_p0 = scmp.lt.u32.totalorder %s727_s0, %s1190_s3 }
 0x457   : > { %p729_p11 = pnand %p728_p12, %p1106_p5 }
 0x459   : > { %p730_p8 = pneg %p729_p11 }
 0x45b   : > { %p735_p6 = pnand %p733_p0, %p730_p8 }
 0x45d   : > { %738 = shalt.err (!%p735_p6)
}
 0x45e   : > { %509 = dma.vmem_to_hbm [thread:$0]  (%p1106_p5), %s371_s27, 128, %s1190_s3, [#allocation5]  }
 0x45f   : > { %792 = dma.done.wait (%p1106_p5), [#allocation5], 128  }
 0x460   : > { %794 = vsyncadd (%p1106_p5), [#allocation5], 4294967168 }
 0x461   : > { %796 = dma.done.wait (%p1106_p5), [#allocation10], 16  }
 0x462   : > { %798 = vsyncadd (%p1106_p5), [#allocation10], 4294967280 }
 0x463 PF: > { %s23_s25 = sadd.s32 1, %s841_s25   ;;  %s1220_s21 = sld [smem:[#allocation15_spill]] }
 0x464   : > { %p20_p13 = scmp.ge.s32.totalorder %s23_s25, 8   ;;  %s1221_s22 = sld [smem:[#allocation16_spill]] }
 0x465   : > { %s1222_s24 = smov %s1233_s18  ;;  %s1223_s8 = sld [smem:[#allocation17_spill]] }
 0x466   : > { %s1224_s15 = smov %s805_s16  ;;  %s1225_s16 = smov %s809_s17 }
 0x467   : > { %s1226_s17 = smov %s1044_s6  ;;  %s1227_s18 = smov %s817_s19 }
 0x468   : > { %s1228_s19 = smov %s821_s20  ;;  %s1229_s20 = smov %s1036_s7 }
 0x469   : > { %s1230_s23 = smov %s1222_s24  ;;  %22 = sbr.rel (!%p20_p13) target bundleno = 13 (0xd), region = 98 }
 0x46b   : > { %s1231_s24 = smov %s1223_s8 }
 0x470   :  { %398 = vsyncpa [#allocation4], 1 }
 0x471   :  { %400 = vsyncpa [#allocation4 + $0x1], 1 }
 0x472   :  { %401 = vsyncpa [#allocation7], 1 }
 0x473   :  { %403 = vsyncpa [#allocation7 + $0x1], 1 }
 0x474   :  { %404 = vsyncpa [#allocation5], 1 }
 0x475   :  { %406 = vsyncpa [#allocation5 + $0x1], 1 }
 0x476   :  { %407 = vsyncpa [#allocation10], 1 }

</bundles_post_ra>
